<compile_context>
chip_gen: v6e
topology: v6e:2x2x1
jax: 0.10.0
libtpu: 0.0.40
codegen_flags: <defaults>
</compile_context>

<pallas_src>
import jax
import jax.numpy as jnp
from jax.experimental import pallas as pl
from jax.experimental.pallas import tpu as pltpu


def se_connect_kernel(x_ref, w1t_ref, b1_ref, w2t_ref, b2_ref, o_ref):
    # squeeze: exact temporal mean (block spans full T), f32 accumulation,
    # without keeping a full-block f32 copy live.
    mean = jnp.mean(x_ref[...], axis=2, dtype=jnp.float32)          # (Bt, C)

    # excitation: linear1 -> relu (weights pre-transposed in the wrapper)
    h = jnp.dot(mean, w1t_ref[...],
                preferred_element_type=jnp.float32) + b1_ref[...]    # (Bt, S)
    h = jnp.maximum(h, 0.0)

    # linear2 -> sigmoid
    s = jnp.dot(h, w2t_ref[...],
                preferred_element_type=jnp.float32) + b2_ref[...]    # (Bt, C)
    s = jax.nn.sigmoid(s)

    # scale: re-read x from VMEM (cheap) and broadcast over time.
    x = x_ref[...]                                                   # (Bt, C, T)
    o_ref[...] = (x.astype(jnp.float32) * s[:, :, None]).astype(o_ref.dtype)


def _pick_batch_tile(B, C, T, itemsize, budget_bytes):
    """Largest batch tile that (a) divides B, (b) fits the streaming-block
    VMEM budget (2x in + 2x out, double-buffered), (c) keeps the grid length
    >= 2 when B >= 2 so v7x's two TensorCores both get work."""
    per_row = C * T * itemsize
    max_bt = max(1, budget_bytes // (4 * per_row))
    if B >= 2:
        max_bt = min(max_bt, B // 2)
    max_bt = max(1, min(max_bt, B))
    bt = 1
    for d in range(1, max_bt + 1):
        if B % d == 0:
            bt = d
    return bt


def se_connect(x, w1, b1, w2, b2):
    """x: (B, C, T); w1: (S, C); b1: (S,); w2: (C, S); b2: (C,).
    Returns x * sigmoid(linear2(relu(linear1(x.mean(-1)))))[:, :, None]."""
    B, C, T = x.shape
    S = w1.shape[0]
    itemsize = jnp.dtype(x.dtype).itemsize

    # Pre-transpose tiny parameter tensors once in the wrapper.
    w1t = jnp.transpose(w1)            # (C, S)
    w2t = jnp.transpose(w2)            # (S, C)
    b1r = jnp.reshape(b1, (1, S))
    b2r = jnp.reshape(b2, (1, C))

    # Batch tile under a streaming-block VMEM budget (leave headroom for
    # params / internal scratch; hard ceiling is v7x's 64 MiB per TC).
    block_budget = 40 << 20
    Bt = _pick_batch_tile(B, C, T, itemsize, block_budget)
    grid = (B // Bt,)

    # Explicit VMEM budget: double-buffered in + out blocks, params (allow
    # double buffers even though they're resident), generous headroom.
    block_bytes = 4 * Bt * C * T * itemsize
    param_bytes = 4 * (C * S + S + S * C + C)
    vmem_limit = int(block_bytes + 4 * param_bytes + (8 << 20))
    assert vmem_limit <= (60 << 20), (
        f"SE_Connect block footprint {vmem_limit/2**20:.1f} MiB exceeds the "
        f"v7x per-TensorCore VMEM budget; shrink Bt or use bf16 I/O."
    )

    cost = pl.CostEstimate(
        flops=4 * B * C * S + 2 * B * C * T,     # two small matmuls + mean + scale
        transcendentals=B * C,                   # sigmoid
        bytes_accessed=2 * B * C * T * itemsize + 2 * param_bytes,
    )

    return pl.pallas_call(
        se_connect_kernel,
        out_shape=jax.ShapeDtypeStruct((B, C, T), x.dtype),
        grid_spec=pltpu.PrefetchScalarGridSpec(
            num_scalar_prefetch=0,
            grid=grid,
            in_specs=[
                # streamed input: Bt batch rows per step, full (C, T) extent
                pl.BlockSpec((Bt, C, T), lambda b: (b, 0, 0)),
                # resident excitation parameters (constant block index)
                pl.BlockSpec((C, S), lambda b: (0, 0)),
                pl.BlockSpec((1, S), lambda b: (0, 0)),
                pl.BlockSpec((S, C), lambda b: (0, 0)),
                pl.BlockSpec((1, C), lambda b: (0, 0)),
            ],
            out_specs=pl.BlockSpec((Bt, C, T), lambda b: (b, 0, 0)),
        ),
        compiler_params=pltpu.CompilerParams(
            dimension_semantics=("parallel",),   # batch steps are independent
            vmem_limit_bytes=vmem_limit,
        ),
        cost_estimate=cost,
    )(x, w1t, b1r, w2t, b2r)


def se_connect_ref(x, w1, b1, w2, b2):
    """Pure-JAX reference mirroring the PyTorch forward."""
    mean = x.astype(jnp.float32).mean(axis=2)
    h = jax.nn.relu(mean @ w1.T + b1)
    s = jax.nn.sigmoid(h @ w2.T + b2)
    return (x.astype(jnp.float32) * s[:, :, None]).astype(x.dtype)


if __name__ == "__main__":
    # Small shapes consistent with SE_Connect(channels=64, se_bottleneck_dim=32)
    B, C, T = 4, 64, 16
    S = 32  # se_bottleneck_dim

    key = jax.random.PRNGKey(0)
    kx, k1, k2, k3, k4 = jax.random.split(key, 5)

    x_f32 = jax.random.normal(kx, (B, C, T), dtype=jnp.float32)

    # Deterministic synthetic parameters (nn.Linear-shaped).
    w1 = jax.random.normal(k1, (S, C), dtype=jnp.float32) * 0.1   # linear1.weight
    b1 = jax.random.normal(k2, (S,), dtype=jnp.float32) * 0.1     # linear1.bias
    w2 = jax.random.normal(k3, (C, S), dtype=jnp.float32) * 0.1   # linear2.weight
    b2 = jax.random.normal(k4, (C,), dtype=jnp.float32) * 0.1     # linear2.bias

    # f32 path
    out = jax.block_until_ready(se_connect(x_f32, w1, b1, w2, b2))
    ref = se_connect_ref(x_f32, w1, b1, w2, b2)
    assert out.shape == (B, C, T)
    assert jnp.allclose(out, ref, atol=1e-5, rtol=1e-5), "f32 mismatch vs reference"

    # bf16 I/O path (halves HBM traffic; math stays f32 inside the kernel)
    x_bf16 = x_f32.astype(jnp.bfloat16)
    out_bf = jax.block_until_ready(se_connect(x_bf16, w1, b1, w2, b2))
    ref_bf = se_connect_ref(x_bf16, w1, b1, w2, b2)
    assert out_bf.dtype == jnp.bfloat16 and out_bf.shape == (B, C, T)
    assert jnp.allclose(out_bf.astype(jnp.float32), ref_bf.astype(jnp.float32),
                        atol=1e-2, rtol=1e-2), "bf16 mismatch vs reference"

    print("KERNEL_OK")
</pallas_src>

<mosaic_0001>
module attributes {stable_mosaic.version = 11 : i64} {
  func.func @se_connect_kernel(%arg0: i32, %arg1: memref<2x64x16xf32, #tpu.memory_space<vmem>>, %arg2: memref<64x32xf32, #tpu.memory_space<vmem>>, %arg3: memref<1x32xf32, #tpu.memory_space<vmem>>, %arg4: memref<32x64xf32, #tpu.memory_space<vmem>>, %arg5: memref<1x64xf32, #tpu.memory_space<vmem>>, %arg6: memref<2x64x16xf32, #tpu.memory_space<vmem>>) attributes {dimension_semantics = [#tpu.dimension_semantics<parallel>], iteration_bounds = array<i64: 2>, scalar_prefetch = 0 : i64, scratch_operands = 0 : i64, tpu.core_type = #tpu.core_type<tc>, window_params = [{transform_indices = @transform_0, window_bounds = array<i64: 2, 64, 16>}, {pipeline_mode = #tpu.pipeline_mode<synchronous>, transform_indices = @transform_1, window_bounds = array<i64: 64, 32>}, {pipeline_mode = #tpu.pipeline_mode<synchronous>, transform_indices = @transform_2, window_bounds = array<i64: 1, 32>}, {pipeline_mode = #tpu.pipeline_mode<synchronous>, transform_indices = @transform_3, window_bounds = array<i64: 32, 64>}, {pipeline_mode = #tpu.pipeline_mode<synchronous>, transform_indices = @transform_4, window_bounds = array<i64: 1, 64>}, {transform_indices = @transform_5, window_bounds = array<i64: 2, 64, 16>}]} {
    %c0 = arith.constant 0 : index
    %c0_0 = arith.constant 0 : index
    %c0_1 = arith.constant 0 : index
    %0 = vector.load %arg1[%c0, %c0_0, %c0_1] : memref<2x64x16xf32, #tpu.memory_space<vmem>>, vector<2x64x16xf32>
    %cst = arith.constant dense<0.000000e+00> : vector<2x64xf32>
    %1 = vector.multi_reduction <add>, %0, %cst [2] : vector<2x64x16xf32> to vector<2x64xf32>
    %cst_2 = arith.constant 1.600000e+01 : f32
    %2 = vector.broadcast %cst_2 : f32 to vector<2x64xf32>
    %3 = arith.divf %1, %2 : vector<2x64xf32>
    %c0_3 = arith.constant 0 : index
    %c0_4 = arith.constant 0 : index
    %4 = vector.load %arg2[%c0_3, %c0_4] : memref<64x32xf32, #tpu.memory_space<vmem>>, vector<64x32xf32>
    %cst_5 = arith.constant dense<0.000000e+00> : vector<2x32xf32>
    %5 = tpu.matmul %3, %4, %cst_5 {dimension_numbers = #tpu.dot_dimension_numbers<[1], [0], [0], [1], [0, 0, 1, 1], [], []>} : vector<2x64xf32>, vector<64x32xf32>, vector<2x32xf32> -> vector<2x32xf32>
    %c0_6 = arith.constant 0 : index
    %c0_7 = arith.constant 0 : index
    %6 = vector.load %arg3[%c0_6, %c0_7] : memref<1x32xf32, #tpu.memory_space<vmem>>, vector<1x32xf32>
    %7 = vector.broadcast %6 : vector<1x32xf32> to vector<2x32xf32>
    %8 = arith.addf %5, %7 : vector<2x32xf32>
    %cst_8 = arith.constant 0.000000e+00 : f32
    %9 = vector.broadcast %cst_8 : f32 to vector<2x32xf32>
    %10 = arith.maximumf %8, %9 : vector<2x32xf32>
    %c0_9 = arith.constant 0 : index
    %c0_10 = arith.constant 0 : index
    %11 = vector.load %arg4[%c0_9, %c0_10] : memref<32x64xf32, #tpu.memory_space<vmem>>, vector<32x64xf32>
    %cst_11 = arith.constant dense<0.000000e+00> : vector<2x64xf32>
    %12 = tpu.matmul %10, %11, %cst_11 {dimension_numbers = #tpu.dot_dimension_numbers<[1], [0], [0], [1], [0, 0, 1, 1], [], []>} : vector<2x32xf32>, vector<32x64xf32>, vector<2x64xf32> -> vector<2x64xf32>
    %c0_12 = arith.constant 0 : index
    %c0_13 = arith.constant 0 : index
    %13 = vector.load %arg5[%c0_12, %c0_13] : memref<1x64xf32, #tpu.memory_space<vmem>>, vector<1x64xf32>
    %14 = vector.broadcast %13 : vector<1x64xf32> to vector<2x64xf32>
    %15 = arith.addf %12, %14 : vector<2x64xf32>
    %16 = arith.negf %15 : vector<2x64xf32>
    %17 = math.exp %16 : vector<2x64xf32>
    %cst_14 = arith.constant 1.000000e+00 : f32
    %18 = vector.broadcast %cst_14 : f32 to vector<2x64xf32>
    %19 = arith.addf %18, %17 : vector<2x64xf32>
    %20 = arith.divf %18, %19 : vector<2x64xf32>
    %c0_15 = arith.constant 0 : index
    %c0_16 = arith.constant 0 : index
    %c0_17 = arith.constant 0 : index
    %21 = vector.load %arg1[%c0_15, %c0_16, %c0_17] : memref<2x64x16xf32, #tpu.memory_space<vmem>>, vector<2x64x16xf32>
    %22 = vector.shape_cast %20 : vector<2x64xf32> to vector<2x64x1xf32>
    %23 = vector.broadcast %22 : vector<2x64x1xf32> to vector<2x64x16xf32>
    %24 = arith.mulf %21, %23 : vector<2x64x16xf32>
    %c0_18 = arith.constant 0 : index
    %c0_19 = arith.constant 0 : index
    %c0_20 = arith.constant 0 : index
    %25 = vector.load %arg6[%c0_18, %c0_19, %c0_20] : memref<2x64x16xf32, #tpu.memory_space<vmem>>, vector<2x64x16xf32>
    tpu.vector_store %arg6[%c0_18, %c0_19, %c0_20], %24 {strides = array<i32>} : memref<2x64x16xf32, #tpu.memory_space<vmem>>, vector<2x64x16xf32>,
    return
  }
  func.func @transform_0(%arg0: i32) -> (i32, i32, i32) {
    %c0_i32 = arith.constant 0 : i32
    %c0_i32_0 = arith.constant 0 : i32
    %c0_i32_1 = arith.constant 0 : i32
    return %arg0, %c0_i32, %c0_i32_0 : i32, i32, i32
  }
  func.func @transform_1(%arg0: i32) -> (i32, i32) {
    %c0_i32 = arith.constant 0 : i32
    %c0_i32_0 = arith.constant 0 : i32
    %c0_i32_1 = arith.constant 0 : i32
    return %c0_i32, %c0_i32_0 : i32, i32
  }
  func.func @transform_2(%arg0: i32) -> (i32, i32) {
    %c0_i32 = arith.constant 0 : i32
    %c0_i32_0 = arith.constant 0 : i32
    %c0_i32_1 = arith.constant 0 : i32
    return %c0_i32, %c0_i32_0 : i32, i32
  }
  func.func @transform_3(%arg0: i32) -> (i32, i32) {
    %c0_i32 = arith.constant 0 : i32
    %c0_i32_0 = arith.constant 0 : i32
    %c0_i32_1 = arith.constant 0 : i32
    return %c0_i32, %c0_i32_0 : i32, i32
  }
  func.func @transform_4(%arg0: i32) -> (i32, i32) {
    %c0_i32 = arith.constant 0 : i32
    %c0_i32_0 = arith.constant 0 : i32
    %c0_i32_1 = arith.constant 0 : i32
    return %c0_i32, %c0_i32_0 : i32, i32
  }
  func.func @transform_5(%arg0: i32) -> (i32, i32, i32) {
    %c0_i32 = arith.constant 0 : i32
    %c0_i32_0 = arith.constant 0 : i32
    %c0_i32_1 = arith.constant 0 : i32
    return %arg0, %c0_i32, %c0_i32_0 : i32, i32, i32
  }
}

</mosaic_0001>

<bundles_post_ra>
// kernel: tpu_custom_call.1
= control target key start
LH: loop header
LB: loop body
LE: loop exit
PB: predicated region body
PF: predicated region fallthrough
CT: control target
= control target key end

     0   :  { %s885_s18 = smov 0   ;;  %s1121_s0 = inlined_call_operand.vmem [shape: f32[4,64,16], index: 0, kind: input, shape index: {}]   ;;  %s1122_s1 = inlined_call_operand.vmem [shape: f32[64,32], index: 1, kind: input, shape index: {}]   ;;  %s1123_s2 = inlined_call_operand.vmem [shape: f32[1,32], index: 2, kind: input, shape index: {}]   ;;  %s1124_s3 = inlined_call_operand.vmem [shape: f32[32,64], index: 3, kind: input, shape index: {}]   ;;  %s1125_s4 = inlined_call_operand.vmem [shape: f32[1,64], index: 4, kind: input, shape index: {}]   ;;  %s1126_s5 = inlined_call_operand.vmem [shape: f32[4,64,16], index: 5, kind: output, shape index: {}]  }
   0x1 LB: > { %s767_s19 = sadd.s32 4294967295, %s851_s18   ;;  %p771_p0 = scmp.ge.s32.totalorder %s851_s18, 1  ;;  %s851_s18 = sphi %s885_s18, %s15_s18  }
   0x2   : > { %p189_p1 = scmp.lt.s32.totalorder %s851_s18, 3 }
   0x4   : > { %p190_p2 = pnand %p771_p0, %p189_p1 }
   0x5   : > { %s772_s20 = sshll.u32 (!%p190_p2), %s767_s19, 1 }
   0x6   : > { %193 = sbr.rel (%p190_p2) target bundleno = 765 (0x2fd), region = 40  ;;  %p220_p3 = scmp.lt.s32.totalorder (!%p190_p2), %s772_s20, 3 }
   0xb   : > { %s1128_s20 = smov (!%p220_p3, %s772_s20), 3  ;;  %vm249_vm0 = vcmask 130048   ;;  %v322_v32 = vld [vmem:[%s1122_s1 + $0x38] sm:$0xff]  ;;  %v853_v33 = vmov 0.0   ;;  %v321_v34 = vld [vmem:[%s1122_s1 + $0x30] sm:$0xff]  ;;  %v320_v35 = vld [vmem:[%s1122_s1 + $0x28] sm:$0xff]  ;;  %v346_v46 = vlaneseq }
   0xc   : > { %s785_s21 = sshll.u32 %s1128_s20, 6  ;;  %801 = vmatprep.subr.mxu0 %v853_v33  ;;  %820 = vmatprep.subr.mxu1 %v853_v33  ;;  %v319_v36 = vld [vmem:[%s1122_s1 + $0x20] sm:$0xff]  ;;  %v318_v37 = vld [vmem:[%s1122_s1 + $0x18] sm:$0xff]  ;;  %v317_v38 = vld [vmem:[%s1122_s1 + $0x10] sm:$0xff]  ;;  %vm854_vm1 = vmmov 0   ;;  %vm357_vm2 = vcmask 130112  }
   0xd   : > { %s901_s24 = scalar_lea.vmem %s1121_s0, %s785_s21  ;;  %802 = vmatpush3.msra.mxu0 %v322_v32  ;;  %v316_v39 = vld [vmem:[%s1122_s1 + $0x8] sm:$0xff]  ;;  %v315_v40 = vld [vmem:[%s1122_s1] sm:$0xff]  ;;  %817 = vmatprep.mubr.msk.f32.mxu0 %vm854_vm1, %v853_v33  ;;  %v519_v41 = vld [vmem:[%s1124_s3 + $0x18] sm:$0xff]  ;;  %v347_v49 = vand.u32 127, %v346_v46  ;;  %v1022_v50 = vshrl.u32 %v346_v46, 7  ;;  %vm364_vm3 = vcmask 195712   ;;  %s1068_s8 = scalar_lea.vmem %s1126_s5, %s785_s21 }
   0xe   : > { %v904_v0 = vld [vmem:[%s901_s24 + $0x40] sm:$0xff]  ;;  %v910_v2 = vld [vmem:[%s901_s24 + $0x48] sm:$0xff]  ;;  %v924_v8 = vld [vmem:[%s901_s24 + $0x50] sm:$0xff]  ;;  %803 = vmatprep.subr.mxu0 %v853_v33  ;;  %828 = vmatprep.mubr.msk.f32.mxu1 %vm854_vm1, %v853_v33  ;;  %vm371_vm4 = vcmask 261312   ;;  %vm378_vm5 = vcmask 326912   ;;  %vm385_vm6 = vcmask 392512  }
   0xf   : > { %v907_v1 = vld [vmem:[%s901_s24] sm:$0xff]  ;;  %v274_v3 = vsel %vm249_vm0, %v904_v0, 0.0  ;;  %v917_v5 = vld [vmem:[%s901_s24 + $0x8] sm:$0xff]  ;;  %v277_v6 = vsel %vm249_vm0, %v910_v2, 0.0  ;;  %v927_v9 = vld [vmem:[%s901_s24 + $0x10] sm:$0xff]  ;;  %v280_v10 = vsel %vm249_vm0, %v924_v8, 0.0  ;;  %804 = vmatpush3.msra.mxu0 %v321_v34  ;;  %821 = vmatpush3.msra.mxu1 %v519_v41  ;;  %v350_v57 = vsub.s32 %v347_v49, %v1022_v50 }
  0x10   : > { %v250_v4 = vsel %vm249_vm0, %v907_v1, 0.0  ;;  %275 = vadd.xlane.f32.xlu1 %v274_v3  ;;  %v253_v7 = vsel %vm249_vm0, %v917_v5, 0.0  ;;  %v256_v11 = vsel %vm249_vm0, %v927_v9, 0.0  ;;  %v934_v12 = vld [vmem:[%s901_s24 + $0x58] sm:$0xff]  ;;  %v944_v16 = vld [vmem:[%s901_s24 + $0x60] sm:$0xff]  ;;  %v954_v20 = vld [vmem:[%s901_s24 + $0x68] sm:$0xff]  ;;  %805 = vmatprep.subr.mxu0 %v853_v33 }
  0x11   : > { %251 = vadd.xlane.f32.xlu0 %v250_v4  ;;  %v937_v13 = vld [vmem:[%s901_s24 + $0x18] sm:$0xff]  ;;  %v283_v14 = vsel %vm249_vm0, %v934_v12, 0.0  ;;  %v947_v17 = vld [vmem:[%s901_s24 + $0x20] sm:$0xff]  ;;  %v286_v18 = vsel %vm249_vm0, %v944_v16, 0.0  ;;  %v957_v21 = vld [vmem:[%s901_s24 + $0x28] sm:$0xff]  ;;  %v289_v22 = vsel %vm249_vm0, %v954_v20, 0.0  ;;  %806 = vmatpush3.msra.mxu0 %v320_v35 }
  0x12   : > { %v259_v15 = vsel %vm249_vm0, %v937_v13, 0.0  ;;  %v262_v19 = vsel %vm249_vm0, %v947_v17, 0.0  ;;  %v265_v23 = vsel %vm249_vm0, %v957_v21, 0.0  ;;  %v964_v24 = vld [vmem:[%s901_s24 + $0x70] sm:$0xff]  ;;  %v974_v28 = vld [vmem:[%s901_s24 + $0x78] sm:$0xff]  ;;  %807 = vmatprep.subr.mxu0 %v853_v33  ;;  %822 = vmatprep.subr.mxu1 %v853_v33  ;;  %v352_v53 = vadd.s32 4294967288, %v347_v49 }
  0x13   : > { %v967_v25 = vld [vmem:[%s901_s24 + $0x30] sm:$0xff]  ;;  %v292_v26 = vsel %vm249_vm0, %v964_v24, 0.0  ;;  %v977_v29 = vld [vmem:[%s901_s24 + $0x38] sm:$0xff]  ;;  %v295_v30 = vsel %vm249_vm0, %v974_v28, 0.0  ;;  %808 = vmatpush3.msra.mxu0 %v319_v36  ;;  %v359_v54 = vadd.s32 4294967280, %v347_v49  ;;  %v366_v55 = vadd.s32 4294967272, %v347_v49 }
  0x14   : > { %278 = vadd.xlane.f32.xlu1 %v277_v6  ;;  %v268_v27 = vsel %vm249_vm0, %v967_v25, 0.0  ;;  %v271_v31 = vsel %vm249_vm0, %v977_v29, 0.0  ;;  %809 = vmatprep.subr.mxu0 %v853_v33  ;;  %v373_v56 = vadd.s32 4294967264, %v347_v49  ;;  %v355_v60 = vsub.s32 %v352_v53, %v1022_v50 }
  0x15   : > { %254 = vadd.xlane.f32.xlu0 %v253_v7  ;;  %810 = vmatpush3.msra.mxu0 %v318_v37  ;;  %v362_v61 = vsub.s32 %v359_v54, %v1022_v50  ;;  %v380_v62 = vadd.s32 4294967256, %v347_v49  ;;  %v369_v63 = vsub.s32 %v366_v55, %v1022_v50  ;;  %v387_v3 = vadd.s32 4294967248, %v347_v49 }
  0x16   : > { %811 = vmatprep.subr.mxu0 %v853_v33  ;;  %v376_v7 = vsub.s32 %v373_v56, %v1022_v50  ;;  %v394_v32 = vadd.s32 4294967240, %v347_v49  ;;  %vm392_vm7 = vcmask 458112   ;;  %vm399_vm8 = vcmask 523712  }
  0x17   : > { %812 = vmatpush3.msra.mxu0 %v317_v38  ;;  %vm440_vm9 = vcmask 1041409   ;;  %vm442_vm10 = vcmask 523264   ;;  %vm527_vm11 = vcmask 261120  }
  0x18   : > { %281 = vadd.xlane.f32.xlu1 %v280_v10  ;;  %813 = vmatprep.subr.mxu0 %v853_v33 }
  0x19   : > { %257 = vadd.xlane.f32.xlu0 %v256_v11  ;;  %814 = vmatpush3.msra.mxu0 %v316_v39 }
  0x1a   : > { %815 = vmatprep.subr.mxu0 %v853_v33 }
  0x1b   : > { %816 = vmatpush3.msra.mxu0 %v315_v40 }
  0x1c   : > { %284 = vadd.xlane.f32.xlu1 %v283_v14 }
  0x1d   : > { %260 = vadd.xlane.f32.xlu0 %v259_v15 }
  0x20   : > { %287 = vadd.xlane.f32.xlu1 %v286_v18 }
  0x21   : > { %263 = vadd.xlane.f32.xlu0 %v262_v19 }
  0x24   : > { %290 = vadd.xlane.f32.xlu1 %v289_v22 }
  0x25   : > { %266 = vadd.xlane.f32.xlu0 %v265_v23 }
  0x28   : > { %293 = vadd.xlane.f32.xlu1 %v292_v26  ;;  %v383_v26 = vsub.s32 %v380_v62, %v1022_v50 }
  0x29   : > { %269 = vadd.xlane.f32.xlu0 %v268_v27 }
  0x2c   : > { %296 = vadd.xlane.f32.xlu1 %v295_v30 }
  0x2d   : > { %272 = vadd.xlane.f32.xlu0 %v271_v31  ;;  %v390_v31 = vsub.s32 %v387_v3, %v1022_v50 }
  0x99   : > { %v276_v42 = vpop.xlane.xlu1 %275 }
  0x9a   : > { %v252_v43 = vpop.xlane.xlu0 %251  ;;  %v307_v10 = vmul.f32 0.0625, %v276_v42 }
  0x9b   : > { %v299_v11 = vmul.f32 0.0625, %v252_v43 }
  0x9c   : > { %v404_v38 = vrot.slane %v307_v10, %v350_v57 }
  0x9d   : > { %v279_v44 = vpop.xlane.xlu1 %278  ;;  %v351_v39 = vrot.slane %v299_v11, %v350_v57 }
  0x9e   : > { %v255_v45 = vpop.xlane.xlu0 %254  ;;  %v308_v4 = vmul.f32 0.0625, %v279_v44 }
  0x9f   : > { %v300_v6 = vmul.f32 0.0625, %v255_v45 }
  0xa0   : > { %v408_v34 = vrot.slane %v308_v4, %v355_v60 }
  0xa1   : > { %v282_v47 = vpop.xlane.xlu1 %281  ;;  %v356_v35 = vrot.slane %v300_v6, %v355_v60 }
  0xa2   : > { %v258_v48 = vpop.xlane.xlu0 %257  ;;  %v309_v14 = vmul.f32 0.0625, %v282_v47  ;;  %v409_v49 = vsel %vm357_vm2, %v408_v34, %v404_v38  ;;  %v780_v38 = vld [vmem:[%s1125_s4] ss:$0 sm:$0xff] }
  0xa3   : > { %v301_v15 = vmul.f32 0.0625, %v258_v48  ;;  %v358_v53 = vsel %vm357_vm2, %v356_v35, %v351_v39 }
  0xa4   : > { %v413_v40 = vrot.slane %v309_v14, %v362_v61 }
  0xa5   : > { %v285_v51 = vpop.xlane.xlu1 %284  ;;  %v363_v41 = vrot.slane %v301_v15, %v362_v61 }
  0xa6   : > { %v261_v52 = vpop.xlane.xlu0 %260  ;;  %v310_v22 = vmul.f32 0.0625, %v285_v51  ;;  %v414_v56 = vsel %vm364_vm3, %v413_v40, %v409_v49 }
  0xa7   : > { %v302_v23 = vmul.f32 0.0625, %v261_v52  ;;  %v397_v52 = vsub.s32 %v394_v32, %v1022_v50  ;;  %v365_v57 = vsel %vm364_vm3, %v363_v41, %v358_v53  ;;  %v778_v32 = vld [vmem:[%s1123_s2] ss:$0 sm:$0xff] }
  0xa8   : > { %v418_v44 = vrot.slane %v310_v22, %v369_v63 }
  0xa9   : > { %v288_v58 = vpop.xlane.xlu1 %287  ;;  %v370_v45 = vrot.slane %v302_v23, %v369_v63 }
  0xaa   : > { %v264_v59 = vpop.xlane.xlu0 %263  ;;  %v311_v27 = vmul.f32 0.0625, %v288_v58  ;;  %v419_v62 = vsel %vm371_vm4, %v418_v44, %v414_v56  ;;  %v609_v44 = vsub.s32 0, %v1022_v50 }
  0xab   : > { %v303_v30 = vmul.f32 0.0625, %v264_v59  ;;  %v372_v63 = vsel %vm371_vm4, %v370_v45, %v365_v57 }
  0xac   : > { %v423_v48 = vrot.slane %v311_v27, %v376_v7  ;;  %v518_v27 = vld [vmem:[%s1124_s3 + $0x10] sm:$0xff] }
  0xad   : > { %v291_v18 = vpop.xlane.xlu1 %290  ;;  %v377_v51 = vrot.slane %v303_v30, %v376_v7  ;;  %823 = vmatpush3.msra.mxu1 %v518_v27  ;;  %v517_v30 = vld [vmem:[%s1124_s3 + $0x8] sm:$0xff] }
  0xae   : > { %v267_v19 = vpop.xlane.xlu0 %266  ;;  %v312_v36 = vmul.f32 0.0625, %v291_v18  ;;  %v424_v6 = vsel %vm378_vm5, %v423_v48, %v419_v62  ;;  %824 = vmatprep.subr.mxu1 %v853_v33 }
  0xaf   : > { %v304_v37 = vmul.f32 0.0625, %v267_v19  ;;  %v379_v7 = vsel %vm378_vm5, %v377_v51, %v372_v63  ;;  %825 = vmatpush3.msra.mxu1 %v517_v30 }
  0xb0   : > { %v428_v54 = vrot.slane %v312_v36, %v383_v26  ;;  %826 = vmatprep.subr.mxu1 %v853_v33 }
  0xb1   : > { %v294_v42 = vpop.xlane.xlu1 %293  ;;  %v384_v55 = vrot.slane %v304_v37, %v383_v26 }
  0xb2   : > { %v270_v43 = vpop.xlane.xlu0 %269  ;;  %v313_v46 = vmul.f32 0.0625, %v294_v42  ;;  %v429_v10 = vsel %vm385_vm6, %v428_v54, %v424_v6 }
  0xb3   : > { %v305_v47 = vmul.f32 0.0625, %v270_v43  ;;  %v386_v11 = vsel %vm385_vm6, %v384_v55, %v379_v7 }
  0xb4   : > { %v433_v58 = vrot.slane %v313_v46, %v390_v31 }
  0xb5   : > { %v391_v59 = vrot.slane %v305_v47, %v390_v31  ;;  %v297_v60 = vpop.xlane.xlu1 %296  ;;  %v516_v31 = vld [vmem:[%s1124_s3] sm:$0xff]  ;;  %v644_v47 = vsub.s32 1, %v1022_v50 }
  0xb6   : > { %v273_v61 = vpop.xlane.xlu0 %272  ;;  %v314_v3 = vmul.f32 0.0625, %v297_v60  ;;  %v434_v18 = vsel %vm392_vm7, %v433_v58, %v429_v10  ;;  %827 = vmatpush3.msra.mxu1 %v516_v31 }
  0xb7   : > { %v306_v4 = vmul.f32 0.0625, %v273_v61  ;;  %v393_v19 = vsel %vm392_vm7, %v391_v59, %v386_v11 }
  0xb8   : > { %v438_v14 = vrot.slane %v314_v3, %v397_v52 }
  0xb9   : > { %v398_v15 = vrot.slane %v306_v4, %v397_v52 }
  0xba   : > { %v439_v23 = vsel %vm399_vm8, %v438_v14, %v434_v18 }
  0xbb   : > { %v400_v22 = vsel %vm399_vm8, %v398_v15, %v393_v19 }
  0xbc   : > { %v441_v26 = vsel %vm440_vm9, %v439_v23, %v400_v22 }
  0xbd   : > { %818 = vmatmul.mubr.msk.f32.vlgmr.msra.gmra.mxu0 %vm442_vm10, %v441_v26 }
 0x17d   : > { %v511_v34 = vpop.f32.mrf.mxu0 }
 0x17e   : > { %v512_v35 = vadd.f32 %v778_v32, %v511_v34 }
 0x17f   : > { %v819_v36 = vpop.f32.mrf.mxu0 }
 0x180   : > { %v515_v37 = vmax.f32 %v512_v35, 0.0 }
 0x182   : > { %829 = vmatmul.mubr.msk.f32.vlgmr.msra.gmra.mxu1 %vm527_vm11, %v515_v37 }
 0x242   : > { %v597_v33 = vpop.f32.mrf.mxu1 }
 0x243   : > { %v598_v39 = vadd.f32 %v780_v38, %v597_v33 }
 0x244   : > { %v830_v40 = vpop.f32.mrf.mxu1 }
 0x245   : > { %v782_v41 = vmul.f32 -1.442695, %v598_v39 }
 0x247   : > { %841 = vpow2.f32 %v782_v41 }
 0x254   : > { %v842_v42 = vpop.eup %841 }
 0x255   : > { %v604_v43 = vadd.f32 1.0, %v842_v42 }
 0x257   : > { %843 = vrcp.f32 %v604_v43 }
 0x264   : > { %v844_v45 = vpop.eup %843 }
 0x265   : > { %v610_v46 = vrot.slane %v844_v45, %v609_v44  ;;  %v645_v48 = vrot.slane %v844_v45, %v644_v47 }
 0x267   : > { %616 = vbcast.lane.b32.xlu1 %v610_v46, 264  ;;  %612 = vbcast.lane.b32.xlu0 %v610_v46, 256 }
 0x26b   : > { %620 = vbcast.lane.b32.xlu1 %v610_v46, 272  ;;  %628 = vbcast.lane.b32.xlu0 %v610_v46, 288 }
 0x26f   : > { %624 = vbcast.lane.b32.xlu1 %v610_v46, 280  ;;  %636 = vbcast.lane.b32.xlu0 %v610_v46, 304 }
 0x273   : > { %632 = vbcast.lane.b32.xlu1 %v610_v46, 296  ;;  %647 = vbcast.lane.b32.xlu0 %v645_v48, 256 }
 0x277   : > { %640 = vbcast.lane.b32.xlu1 %v610_v46, 312  ;;  %655 = vbcast.lane.b32.xlu0 %v645_v48, 272 }
 0x27b   : > { %651 = vbcast.lane.b32.xlu1 %v645_v48, 264  ;;  %663 = vbcast.lane.b32.xlu0 %v645_v48, 288 }
 0x27f   : > { %659 = vbcast.lane.b32.xlu1 %v645_v48, 280  ;;  %671 = vbcast.lane.b32.xlu0 %v645_v48, 304 }
 0x283   : > { %667 = vbcast.lane.b32.xlu1 %v645_v48, 296 }
 0x287   : > { %675 = vbcast.lane.b32.xlu1 %v645_v48, 312 }
 0x2d9   : > { %v617_v50 = vpop.permute.xlu1 %616  ;;  %v613_v51 = vpop.permute.xlu0 %612 }
 0x2da   : > { %v678_v52 = vmul.f32 %v617_v50, %v917_v5  ;;  %v677_v49 = vmul.f32 %v613_v51, %v907_v1 }
 0x2dc   : > { %694 = vst.msk [vmem:[%s1068_s8 + $0x8] sm:$0xff] %vm249_vm0, %v678_v52  ;;  %693 = vst.msk [vmem:[%s1068_s8] sm:$0xff] %vm249_vm0, %v677_v49 }
 0x2dd   : > { %v621_v53 = vpop.permute.xlu1 %620  ;;  %v629_v54 = vpop.permute.xlu0 %628 }
 0x2de   : > { %v679_v55 = vmul.f32 %v621_v53, %v927_v9  ;;  %v681_v56 = vmul.f32 %v629_v54, %v947_v17 }
 0x2e0   : > { %695 = vst.msk [vmem:[%s1068_s8 + $0x10] sm:$0xff] %vm249_vm0, %v679_v55  ;;  %697 = vst.msk [vmem:[%s1068_s8 + $0x20] sm:$0xff] %vm249_vm0, %v681_v56 }
 0x2e1   : > { %v625_v57 = vpop.permute.xlu1 %624  ;;  %v637_v5 = vpop.permute.xlu0 %636 }
 0x2e2   : > { %v680_v1 = vmul.f32 %v625_v57, %v937_v13  ;;  %v683_v58 = vmul.f32 %v637_v5, %v967_v25 }
 0x2e4   : > { %696 = vst.msk [vmem:[%s1068_s8 + $0x18] sm:$0xff] %vm249_vm0, %v680_v1  ;;  %699 = vst.msk [vmem:[%s1068_s8 + $0x30] sm:$0xff] %vm249_vm0, %v683_v58 }
 0x2e5   : > { %v633_v59 = vpop.permute.xlu1 %632  ;;  %v648_v9 = vpop.permute.xlu0 %647 }
 0x2e6   : > { %v682_v17 = vmul.f32 %v633_v59, %v957_v21  ;;  %v685_v60 = vmul.f32 %v648_v9, %v904_v0 }
 0x2e8   : > { %698 = vst.msk [vmem:[%s1068_s8 + $0x28] sm:$0xff] %vm249_vm0, %v682_v17  ;;  %701 = vst.msk [vmem:[%s1068_s8 + $0x40] sm:$0xff] %vm249_vm0, %v685_v60 }
 0x2e9   : > { %v641_v61 = vpop.permute.xlu1 %640  ;;  %v656_v13 = vpop.permute.xlu0 %655 }
 0x2ea   : > { %v684_v25 = vmul.f32 %v641_v61, %v977_v29  ;;  %v687_v62 = vmul.f32 %v656_v13, %v924_v8 }
 0x2ec   : > { %700 = vst.msk [vmem:[%s1068_s8 + $0x38] sm:$0xff] %vm249_vm0, %v684_v25  ;;  %703 = vst.msk [vmem:[%s1068_s8 + $0x50] sm:$0xff] %vm249_vm0, %v687_v62 }
 0x2ed   : > { %v652_v21 = vpop.permute.xlu1 %651  ;;  %v664_v63 = vpop.permute.xlu0 %663 }
 0x2ee   : > { %v686_v0 = vmul.f32 %v652_v21, %v910_v2  ;;  %v689_v3 = vmul.f32 %v664_v63, %v944_v16 }
 0x2f0   : > { %702 = vst.msk [vmem:[%s1068_s8 + $0x48] sm:$0xff] %vm249_vm0, %v686_v0  ;;  %705 = vst.msk [vmem:[%s1068_s8 + $0x60] sm:$0xff] %vm249_vm0, %v689_v3 }
 0x2f1   : > { %v660_v4 = vpop.permute.xlu1 %659  ;;  %v672_v29 = vpop.permute.xlu0 %671 }
 0x2f2   : > { %v688_v8 = vmul.f32 %v660_v4, %v934_v12  ;;  %v691_v6 = vmul.f32 %v672_v29, %v964_v24 }
 0x2f4   : > { %704 = vst.msk [vmem:[%s1068_s8 + $0x58] sm:$0xff] %vm249_vm0, %v688_v8  ;;  %707 = vst.msk [vmem:[%s1068_s8 + $0x70] sm:$0xff] %vm249_vm0, %v691_v6 }
 0x2f5   : > { %v668_v7 = vpop.permute.xlu1 %667 }
 0x2f6   : > { %v690_v10 = vmul.f32 %v668_v7, %v954_v20 }
 0x2f8   : > { %706 = vst.msk [vmem:[%s1068_s8 + $0x68] sm:$0xff] %vm249_vm0, %v690_v10 }
 0x2f9   : > { %v676_v2 = vpop.permute.xlu1 %675 }
 0x2fa   : > { %v692_v16 = vmul.f32 %v676_v2, %v974_v28 }
 0x2fc   : > { %708 = vst.msk [vmem:[%s1068_s8 + $0x78] sm:$0xff] %vm249_vm0, %v692_v16 }
 0x2fd PF: > { %s15_s18 = sadd.s32 1, %s851_s18  }
 0x2fe   : > { %p12_p4 = scmp.ge.s32.totalorder %s15_s18, 4  }
 0x300   :  { %14 = sbr.rel (!%p12_p4) target bundleno = 1 (0x1), region = 70 }

</bundles_post_ra>
